<compile_context>
chip_gen: v7x
topology: tpu7x:2x2x1
jax: 0.10.0
libtpu: 0.0.40
codegen_flags: <defaults>
</compile_context>

<pallas_src>
import functools
import math

import jax
import jax.numpy as jnp
from jax.experimental import pallas as pl
from jax.experimental.pallas import tpu as pltpu


def _round_up(x, m):
    return ((x + m - 1) // m) * m


def _cdiv(a, b):
    return -(-a // b)


# ---------------------------------------------------------------------------
# Pallas GEMM:  out[N, Cout] = cols[N, CK] @ Wt[CK, Cout] + bias
# ---------------------------------------------------------------------------
def _gemm_kernel(cols_ref, w_ref, b_ref, o_ref, acc_ref, *, tk, n_k, w_resident):
    # grid = (co, n, k); the reduction axis k is last ("arbitrary").
    k = pl.program_id(2)

    @pl.when(k == 0)
    def _():
        acc_ref[...] = jnp.zeros_like(acc_ref)

    if w_resident and n_k > 1:
        # Wt block is the full (ck_pad, tc) panel, resident in VMEM across the whole
        # grid; slice out the current K chunk (tk is a multiple of 128).
        w = w_ref[pl.ds(pl.multiple_of(k * tk, tk), tk), :]
    else:
        w = w_ref[...]

    acc_ref[...] += jnp.dot(cols_ref[...], w, preferred_element_type=jnp.float32)

    @pl.when(k == n_k - 1)
    def _():
        o_ref[...] = (acc_ref[...] + b_ref[...]).astype(o_ref.dtype)


def _gemm_static_cfg(ck, cout, *, tk_max=1024, tc_max=1024, w_resident_limit=8 << 20):
    """Tile / padding config that only depends on (CK, Cout) — precomputable in __init__.

    K is padded to the next multiple of 128 (plus a minimal uniform-tile search), NOT
    blindly rounded up to the K tile size."""
    cout_128 = _round_up(cout, 128)
    kc = max(1, _cdiv(cout_128, tc_max))
    tc = _round_up(_cdiv(cout_128, kc), 128)
    cout_pad = tc * kc

    ck_128 = _round_up(ck, 128)
    kk_min = max(1, _cdiv(ck_128, tk_max))
    best = None
    for kk in range(kk_min, min(kk_min + 16, ck_128 // 128 + 1)):
        tk = _round_up(_cdiv(ck_128, kk), 128)
        pad = tk * kk - ck_128
        if best is None or pad < best[0]:
            best = (pad, tk, kk)
        if pad == 0:
            break
    _, tk, kk = best
    ck_pad = tk * kk

    # Keep the whole (ck_pad, tc) weight panel resident in VMEM unless it is large.
    w_resident = ck_pad * tc * 2 <= w_resident_limit
    return dict(ck_pad=ck_pad, tk=tk, cout_pad=cout_pad, tc=tc, w_resident=w_resident)


def _gemm_m_tiles(n, *, tm_max=512):
    """>= 2 N tiles whenever N >= 256 so the 'parallel' N axis shards across both v7x TCs."""
    n_128 = _round_up(n, 128)
    nt = max(2, _cdiv(n_128, tm_max)) if n_128 >= 256 else 1
    tm = _round_up(_cdiv(n_128, nt), 128)
    return tm, _round_up(n_128, tm)


def _deform_gemm(cols, wt_pad, bias_pad, cfg):
    """cols[N, CK] (bf16) @ wt_pad[CK_pad, Cout_pad] (bf16) + bias -> f32 [N, Cout_pad]."""
    n, ck = cols.shape
    ck_pad, tk = cfg["ck_pad"], cfg["tk"]
    cout_pad, tc = cfg["cout_pad"], cfg["tc"]
    w_resident = cfg["w_resident"]

    tm, n_pad = _gemm_m_tiles(n)
    cols_p = jnp.pad(cols, ((0, n_pad - n), (0, ck_pad - ck)))   # bf16-only pad pass

    c_tiles = cout_pad // tc
    n_tiles = n_pad // tm
    k_tiles = ck_pad // tk

    if w_resident:
        w_spec = pl.BlockSpec((ck_pad, tc), lambda co, i, k: (0, co))
        w_bytes = ck_pad * tc * 2
    else:
        w_spec = pl.BlockSpec((tk, tc), lambda co, i, k: (k, co))
        w_bytes = 2 * tk * tc * 2

    # Rough VMEM budget (double-buffered cols/out + resident W + f32 accumulator); with
    # the tile caps above this stays far below v7x's 64 MiB/TC.
    vmem_bytes = 2 * tm * tk * 2 + w_bytes + 2 * tm * tc * 4 + tm * tc * 4 + 2 * tc * 4
    vmem_limit = int(min(56 << 20, max(32 << 20, vmem_bytes + (8 << 20))))

    kernel = functools.partial(_gemm_kernel, tk=tk, n_k=k_tiles, w_resident=w_resident)

    out = pl.pallas_call(
        kernel,
        out_shape=jax.ShapeDtypeStruct((n_pad, cout_pad), jnp.float32),
        grid=(c_tiles, n_tiles, k_tiles),
        in_specs=[
            pl.BlockSpec((tm, tk), lambda co, i, k: (i, k)),
            w_spec,
            pl.BlockSpec((1, tc), lambda co, i, k: (0, co)),
        ],
        out_specs=pl.BlockSpec((tm, tc), lambda co, i, k: (i, co)),
        scratch_shapes=[pltpu.VMEM((tm, tc), jnp.float32)],
        compiler_params=pltpu.CompilerParams(
            dimension_semantics=("parallel", "parallel", "arbitrary"),
            vmem_limit_bytes=vmem_limit,
        ),
    )(cols_p, wt_pad, bias_pad)
    return out[:n, :]


# ---------------------------------------------------------------------------
# JAX glue: offset/mask slicing, weight permutation, deformable bilinear sampling
# ---------------------------------------------------------------------------
def _split_offset_mask(om, dg, K):
    """om: [B, Ho, Wo, 3*dg*K] NHWC conv_offset_mask output.

    offset = cat(o1, o2) == the first 2*dg*K channels, read with the CUDA interleaved
    (y, x)-per-kernel-point layout.  Returns dy, dx, mask, each [B, dg, Ho, Wo, K]."""
    B, Ho, Wo, _ = om.shape
    offs = om[..., : 2 * dg * K].reshape(B, Ho, Wo, dg, K, 2)
    dy = jnp.transpose(offs[..., 0], (0, 3, 1, 2, 4))
    dx = jnp.transpose(offs[..., 1], (0, 3, 1, 2, 4))
    m = jax.nn.sigmoid(
        jnp.transpose(om[..., 2 * dg * K:].reshape(B, Ho, Wo, dg, K), (0, 3, 1, 2, 4)))
    return dy, dx, m


def _permute_weight(weight, dg):
    """[Cout, Cin, KH, KW] -> [Cout, CK] with feature order (dg, kh*kw, Cg), matching
    the column layout produced by _deform_sample."""
    cout, cin, kh, kw = weight.shape
    cg = cin // dg
    w = weight.reshape(cout, dg, cg, kh * kw)
    return jnp.transpose(w, (0, 1, 3, 2)).reshape(cout, cin * kh * kw)


def _deform_sample(x, dy, dx, m, kernel_size, stride, padding, dilation, dg,
                   out_dtype=jnp.bfloat16):
    """Modulated deformable im2col (CUDA dmcn_im2col_bilinear rules).

    dy/dx/m: [B, dg, Ho, Wo, K].  Sampling positions & bilinear weights are computed in
    f32 regardless of x dtype; mask + corner validity are fused into the combine.  The
    gather is channels-last so every corner fetch is a contiguous Cg row.  Returns
    cols[B*Ho*Wo, Cin*K] in `out_dtype`, feature order (dg, k, cg)."""
    B, Cin, H, W = x.shape
    KH, KW = kernel_size
    K = KH * KW
    Cg = Cin // dg
    _, _, Ho, Wo, _ = dy.shape
    Q = Ho * Wo * K
    f32 = jnp.float32

    ki = jnp.repeat(jnp.arange(KH), KW).astype(f32)           # [K]
    kj = jnp.tile(jnp.arange(KW), KH).astype(f32)             # [K]
    h_base = (jnp.arange(Ho) * stride - padding).astype(f32)  # [Ho]
    w_base = (jnp.arange(Wo) * stride - padding).astype(f32)  # [Wo]

    py = (h_base[None, None, :, None, None]
          + (ki * dilation)[None, None, None, None, :]) + dy.astype(f32)
    px = (w_base[None, None, None, :, None]
          + (kj * dilation)[None, None, None, None, :]) + dx.astype(f32)
    # py/px: [B, dg, Ho, Wo, K] (f32)

    valid = (py > -1.0) & (py < H) & (px > -1.0) & (px < W)

    yl = jnp.floor(py)
    xl = jnp.floor(px)
    ly = py - yl
    lx = px - xl
    hy = 1.0 - ly
    hx = 1.0 - lx
    yl_i = yl.astype(jnp.int32)
    xl_i = xl.astype(jnp.int32)
    yh_i = yl_i + 1
    xh_i = xl_i + 1

    # Channels-last copy of x: each gathered sample is a contiguous Cg row.
    x_cl = jnp.transpose(x.reshape(B, dg, Cg, H, W), (0, 1, 3, 4, 2))
    x_cl = x_cl.reshape(B, dg, H * W, Cg).astype(f32)

    def corner(yi, xi):
        ok = ((yi >= 0) & (yi < H) & (xi >= 0) & (xi < W)).astype(f32)
        idx = (jnp.clip(yi, 0, H - 1) * W + jnp.clip(xi, 0, W - 1)).reshape(B, dg, Q)
        v = jnp.take_along_axis(x_cl, idx[..., None], axis=2)   # [B, dg, Q, Cg]
        return v, ok.reshape(B, dg, Q, 1)

    v1, ok1 = corner(yl_i, xl_i)
    v2, ok2 = corner(yl_i, xh_i)
    v3, ok3 = corner(yh_i, xl_i)
    v4, ok4 = corner(yh_i, xh_i)

    w1 = (hy * hx).reshape(B, dg, Q, 1) * ok1
    w2 = (hy * lx).reshape(B, dg, Q, 1) * ok2
    w3 = (ly * hx).reshape(B, dg, Q, 1) * ok3
    w4 = (ly * lx).reshape(B, dg, Q, 1) * ok4

    wm = (valid.astype(f32) * m.astype(f32)).reshape(B, dg, Q, 1)
    val = (w1 * v1 + w2 * v2 + w3 * v3 + w4 * v4) * wm           # [B, dg, Q, Cg] f32
    val = val.astype(out_dtype)                                  # cast at the source

    # -> cols[N, CK] with feature order (dg, k, cg); for dg == 1 the transpose only
    # moves a size-1 axis (free).
    val = val.reshape(B, dg, Ho, Wo, K, Cg)
    val = jnp.transpose(val, (0, 2, 3, 1, 4, 5))
    return val.reshape(B * Ho * Wo, Cin * K)


def _im2col_ref(x, kernel_size, stride, padding, dilation):
    """Reference-only im2col -> [Cin*K, B*Ho*Wo] (feature order (c, k))."""
    B, C, H, W = x.shape
    KH, KW = kernel_size
    Ho = (H + 2 * padding - dilation * (KH - 1) - 1) // stride + 1
    Wo = (W + 2 * padding - dilation * (KW - 1) - 1) // stride + 1
    xp = jnp.pad(x, ((0, 0), (0, 0), (padding, padding), (padding, padding)))
    idx_h = jnp.arange(Ho) * stride
    idx_w = jnp.arange(Wo) * stride
    patches = []
    for i in range(KH):
        for j in range(KW):
            p = jnp.take(xp, i * dilation + idx_h, axis=2)
            p = jnp.take(p, j * dilation + idx_w, axis=3)
            patches.append(p)                              # [B, C, Ho, Wo]
    cols = jnp.stack(patches, axis=2)                      # [B, C, K, Ho, Wo]
    cols = jnp.transpose(cols, (1, 2, 0, 3, 4))            # [C, K, B, Ho, Wo]
    return cols.reshape(C * KH * KW, B * Ho * Wo), Ho, Wo


# ---------------------------------------------------------------------------
# Module
# ---------------------------------------------------------------------------
class ModulatedDeformConvPack:
    def __init__(self, in_channels, out_channels, kernel_size, stride=1, padding=0,
                 dilation=1, groups=1, deformable_groups=1, bias=True, key=None):
        assert groups == 1, "groups != 1 not supported"  # TODO(synk): grouped deform conv
        assert in_channels % deformable_groups == 0
        self.in_channels = in_channels
        self.out_channels = out_channels
        self.kernel_size = (kernel_size, kernel_size) if isinstance(kernel_size, int) \
            else tuple(kernel_size)
        self.stride = stride
        self.padding = padding
        self.dilation = dilation
        self.groups = groups
        self.deformable_groups = deformable_groups
        self.with_bias = bias

        KH, KW = self.kernel_size
        key = jax.random.PRNGKey(0) if key is None else key
        k_w, k_b, k_ow, k_ob = jax.random.split(key, 4)

        n = in_channels * KH * KW
        stdv = 1.0 / math.sqrt(n)
        self.weight = jax.random.uniform(
            k_w, (out_channels, in_channels // groups, KH, KW), jnp.float32, -stdv, stdv)
        self.bias = (jax.random.uniform(k_b, (out_channels,), jnp.float32, -stdv, stdv)
                     if bias else jnp.zeros((out_channels,), jnp.float32))

        # conv_offset_mask: the PyTorch module zero-inits these; small deterministic
        # random values are used instead so the deformable sampling path is exercised.
        com = deformable_groups * 3 * KH * KW
        self.om_weight = 0.1 * jax.random.normal(
            k_ow, (com, in_channels // groups, KH, KW), jnp.float32)
        self.om_bias = 0.1 * jax.random.normal(k_ob, (com,), jnp.float32)

        # Pallas GEMM static config + pre-padded bf16 Wt / f32 bias (done once, not per
        # forward call).
        CK = (in_channels // groups) * KH * KW
        self._gemm_cfg = _gemm_static_cfg(CK, out_channels)
        w2 = _permute_weight(self.weight, deformable_groups)           # [Cout, CK]
        self._wt_pad = jnp.pad(
            jnp.transpose(w2).astype(jnp.bfloat16),
            ((0, self._gemm_cfg["ck_pad"] - CK),
             (0, self._gemm_cfg["cout_pad"] - out_channels)))
        self._bias_pad = jnp.pad(
            self.bias.astype(jnp.float32),
            (0, self._gemm_cfg["cout_pad"] - out_channels)).reshape(1, -1)

    def __call__(self, x):
        B, Cin, H, W = x.shape
        KH, KW = self.kernel_size
        K = KH * KW
        dg = self.deformable_groups
        Cout = self.out_channels

        # conv_offset_mask: tiny output-channel count -> XLA native conv (avoids a 9x
        # im2col HBM expansion), NHWC output, f32/HIGHEST (offsets feed floor()).
        om = jax.lax.conv_general_dilated(
            x.astype(jnp.float32), self.om_weight,
            window_strides=(self.stride, self.stride),
            padding=[(self.padding, self.padding), (self.padding, self.padding)],
            dimension_numbers=("NCHW", "OIHW", "NHWC"),
            precision=jax.lax.Precision.HIGHEST,
        ) + self.om_bias[None, None, None, :]
        Ho, Wo = om.shape[1], om.shape[2]

        # Slice dy/dx/mask straight from the NHWC conv output (chunk + cat is the
        # identity on the first 2*dg*K channels -> no concat / layout passes).
        dy, dx, m = _split_offset_mask(om, dg, K)

        # Modulated deformable im2col, emitted directly as bf16 [N, CK] columns.
        cols = _deform_sample(x, dy, dx, m, self.kernel_size, self.stride, self.padding,
                              self.dilation, dg, out_dtype=jnp.bfloat16)

        # Weight-resident Pallas GEMM: out[N, Cout] = cols @ Wt + b.
        out = _deform_gemm(cols, self._wt_pad, self._bias_pad, self._gemm_cfg)
        out = out[:, :Cout].reshape(B, Ho, Wo, Cout)
        return jnp.transpose(out, (0, 3, 1, 2))


# ---------------------------------------------------------------------------
# Pure-JAX f32 reference (no Pallas, no bf16) for a correctness check.
# ---------------------------------------------------------------------------
def _reference_forward(mod, x):
    B, Cin, H, W = x.shape
    KH, KW = mod.kernel_size
    K = KH * KW
    dg = mod.deformable_groups
    hi = jax.lax.Precision.HIGHEST

    cols0, Ho, Wo = _im2col_ref(x, mod.kernel_size, mod.stride, mod.padding, dilation=1)
    om = jnp.dot(mod.om_weight.reshape(-1, Cin * K), cols0, precision=hi) \
        + mod.om_bias[:, None]
    om = jnp.transpose(om.reshape(-1, B, Ho, Wo), (1, 2, 3, 0))          # NHWC
    dy, dx, m = _split_offset_mask(om, dg, K)

    cols = _deform_sample(x, dy, dx, m, mod.kernel_size, mod.stride, mod.padding,
                          mod.dilation, dg, out_dtype=jnp.float32)       # [N, CK]
    w2 = _permute_weight(mod.weight, dg)                                 # [Cout, CK]
    out = jnp.dot(cols, jnp.transpose(w2), precision=hi) + mod.bias[None, :]
    out = out.reshape(B, Ho, Wo, mod.out_channels)
    return jnp.transpose(out, (0, 3, 1, 2))


if __name__ == "__main__":
    key = jax.random.PRNGKey(0)
    kx, kp = jax.random.split(key)

    B, Cin, H, W = 2, 4, 16, 16
    Cout, ksz = 8, 3

    x = jax.random.normal(kx, (B, Cin, H, W), jnp.float32)
    mod = ModulatedDeformConvPack(Cin, Cout, ksz, stride=1, padding=1,
                                  dilation=1, groups=1, deformable_groups=1,
                                  bias=True, key=kp)

    fwd = jax.jit(lambda inp: mod(inp))
    y = fwd(x)
    jax.block_until_ready(y)

    assert y.shape == (B, Cout, H, W), y.shape
    assert bool(jnp.all(jnp.isfinite(y)))

    # Loose tolerance: the Pallas GEMM feeds the MXU with bf16 operands (f32 accum);
    # the f32 offsets (floor() inputs) are exact in both paths.
    y_ref = _reference_forward(mod, x)
    err = float(jnp.max(jnp.abs(y - y_ref)))
    assert err < 1e-1, f"max abs err vs f32 reference = {err}"

    print("KERNEL_OK")
</pallas_src>

<mosaic_0001>
module attributes {stable_mosaic.version = 11 : i64} {
  func.func @_gemm_kernel(%arg0: i32, %arg1: i32, %arg2: i32, %arg3: memref<256x128xbf16, #tpu.memory_space<vmem>>, %arg4: memref<128x128xbf16, #tpu.memory_space<vmem>>, %arg5: memref<1x128xf32, #tpu.memory_space<vmem>>, %arg6: memref<256x128xf32, #tpu.memory_space<vmem>>, %arg7: memref<256x128xf32, #tpu.memory_space<vmem>>) attributes {dimension_semantics = [#tpu.dimension_semantics<parallel>, #tpu.dimension_semantics<parallel>, #tpu.dimension_semantics<arbitrary>], iteration_bounds = array<i64: 1, 2, 1>, scalar_prefetch = 0 : i64, scratch_operands = 1 : i64, tpu.core_type = #tpu.core_type<tc>, window_params = [{transform_indices = @transform_0, window_bounds = array<i64: 256, 128>}, {transform_indices = @transform_1, window_bounds = array<i64: 128, 128>}, {transform_indices = @transform_2, window_bounds = array<i64: 1, 128>}, {transform_indices = @transform_3, window_bounds = array<i64: 256, 128>}]} {
    %c0_i32 = arith.constant 0 : i32
    %0 = arith.cmpi eq, %arg2, %c0_i32 : i32
    %1 = arith.extui %0 : i1 to i32
    %c0_i32_0 = arith.constant 0 : i32
    %2 = arith.cmpi ne, %1, %c0_i32_0 : i32
    scf.if %2 {
      %cst_10 = arith.constant 0.000000e+00 : f32
      %12 = vector.broadcast %cst_10 : f32 to vector<256x128xf32>
      %c0_11 = arith.constant 0 : index
      %c0_12 = arith.constant 0 : index
      %13 = vector.load %arg7[%c0_11, %c0_12] : memref<256x128xf32, #tpu.memory_space<vmem>>, vector<256x128xf32>
      tpu.vector_store %arg7[%c0_11, %c0_12], %12 {strides = array<i32>} : memref<256x128xf32, #tpu.memory_space<vmem>>, vector<256x128xf32>,
    } else {
    }
    %c0 = arith.constant 0 : index
    %c0_1 = arith.constant 0 : index
    %3 = vector.load %arg4[%c0, %c0_1] : memref<128x128xbf16, #tpu.memory_space<vmem>>, vector<128x128xbf16>
    %c0_2 = arith.constant 0 : index
    %c0_3 = arith.constant 0 : index
    %4 = vector.load %arg7[%c0_2, %c0_3] : memref<256x128xf32, #tpu.memory_space<vmem>>, vector<256x128xf32>
    %c0_4 = arith.constant 0 : index
    %c0_5 = arith.constant 0 : index
    %5 = vector.load %arg3[%c0_4, %c0_5] : memref<256x128xbf16, #tpu.memory_space<vmem>>, vector<256x128xbf16>
    %cst = arith.constant dense<0.000000e+00> : vector<256x128xf32>
    %6 = tpu.matmul %5, %3, %cst {dimension_numbers = #tpu.dot_dimension_numbers<[1], [0], [0], [1], [0, 0, 1, 1], [], []>} : vector<256x128xbf16>, vector<128x128xbf16>, vector<256x128xf32> -> vector<256x128xf32>
    %7 = arith.addf %4, %6 : vector<256x128xf32>
    %c0_6 = arith.constant 0 : index
    %c0_7 = arith.constant 0 : index
    %8 = vector.load %arg7[%c0_6, %c0_7] : memref<256x128xf32, #tpu.memory_space<vmem>>, vector<256x128xf32>
    tpu.vector_store %arg7[%c0_6, %c0_7], %7 {strides = array<i32>} : memref<256x128xf32, #tpu.memory_space<vmem>>, vector<256x128xf32>,
    %c0_i32_8 = arith.constant 0 : i32
    %9 = arith.cmpi eq, %arg2, %c0_i32_8 : i32
    %10 = arith.extui %9 : i1 to i32
    %c0_i32_9 = arith.constant 0 : i32
    %11 = arith.cmpi ne, %10, %c0_i32_9 : i32
    scf.if %11 {
      %c0_10 = arith.constant 0 : index
      %c0_11 = arith.constant 0 : index
      %12 = vector.load %arg7[%c0_10, %c0_11] : memref<256x128xf32, #tpu.memory_space<vmem>>, vector<256x128xf32>
      %c0_12 = arith.constant 0 : index
      %c0_13 = arith.constant 0 : index
      %13 = vector.load %arg5[%c0_12, %c0_13] : memref<1x128xf32, #tpu.memory_space<vmem>>, vector<1x128xf32>
      %14 = vector.broadcast %13 : vector<1x128xf32> to vector<256x128xf32>
      %15 = arith.addf %12, %14 : vector<256x128xf32>
      %c0_14 = arith.constant 0 : index
      %c0_15 = arith.constant 0 : index
      %16 = vector.load %arg6[%c0_14, %c0_15] : memref<256x128xf32, #tpu.memory_space<vmem>>, vector<256x128xf32>
      tpu.vector_store %arg6[%c0_14, %c0_15], %15 {strides = array<i32>} : memref<256x128xf32, #tpu.memory_space<vmem>>, vector<256x128xf32>,
    } else {
    }
    return
  }
  func.func @transform_0(%arg0: i32, %arg1: i32, %arg2: i32) -> (i32, i32) {
    %c0_i32 = arith.constant 0 : i32
    return %arg1, %arg2 : i32, i32
  }
  func.func @transform_1(%arg0: i32, %arg1: i32, %arg2: i32) -> (i32, i32) {
    %c0_i32 = arith.constant 0 : i32
    %c0_i32_0 = arith.constant 0 : i32
    return %c0_i32, %arg0 : i32, i32
  }
  func.func @transform_2(%arg0: i32, %arg1: i32, %arg2: i32) -> (i32, i32) {
    %c0_i32 = arith.constant 0 : i32
    %c0_i32_0 = arith.constant 0 : i32
    return %c0_i32, %arg0 : i32, i32
  }
  func.func @transform_3(%arg0: i32, %arg1: i32, %arg2: i32) -> (i32, i32) {
    %c0_i32 = arith.constant 0 : i32
    return %arg1, %arg0 : i32, i32
  }
}

</mosaic_0001>

<bundles_post_ra>
// kernel: _lambda_.1
= control target key start
LH: loop header
LB: loop body
LE: loop exit
PB: predicated region body
PF: predicated region fallthrough
CT: control target
= control target key end

     0   :  { %s1161_s12 = smov 0   ;;  %s1163_s13 = smov 0   ;;  %s1311_s0 = inlined_call_operand.vmem [shape: bf16[512,128], index: 0, kind: input, shape index: {}]   ;;  %s1312_s1 = inlined_call_operand.vmem [shape: bf16[128,128], index: 1, kind: input, shape index: {}]   ;;  %s1313_s2 = inlined_call_operand.vmem [shape: f32[1,128], index: 2, kind: input, shape index: {}]   ;;  %s1314_s3 = inlined_call_operand.vmem [shape: f32[512,128], index: 3, kind: output, shape index: {}]  }
   0x1   :  { %s1165_s14 = smov 0  }
   0x2 LB: > { %s28_s15 = sadd.s32 1, %s1135_s13  ;;  %p949_p0 = scmp.ge.s32.totalorder %s1139_s14, 1  ;;  %s1139_s14 = sphi %s1165_s14, %s13_s14   ;;  %s1135_s13 = sphi %s1163_s13, %s1316_s13   ;;  %s1131_s12 = sphi %s1161_s12, %s1315_s12  }
   0x3   : > { %p30_p1 = scmp.ge.s32.totalorder %s28_s15, 2  ;;  %p181_p2 = scmp.lt.s32.totalorder %s1139_s14, 3 }
   0x5   : > { %s1318_s15 = smov (%p30_p1, %s28_s15), 0  ;;  %p182_p3 = pnand %p949_p0, %p181_p2 }
   0x6   : > { %v1093_v0 = vld [vmem:[%s1312_s1] sm:$0xff] (!%p182_p3)   ;;  %s950_s18 = sshll.u32 (!%p182_p3), %s1131_s12, 5  ;;  %v1094_v1 = vld [vmem:[%s1312_s1 + $0x8] sm:$0xff] (!%p182_p3)   ;;  %v1095_v2 = vld [vmem:[%s1312_s1 + $0x10] sm:$0xff] (!%p182_p3)  }
   0x7   : > { %185 = sbr.rel (%p182_p3) target bundleno = 281 (0x119), region = 32  ;;  %p219_p4 = scmp.lt.s32.totalorder (!%p182_p3), %s950_s18, 63  ;;  %1005 = vmatprep.subr.bf16.mxu0 (!%p182_p3), %v1093_v0  ;;  %1053 = vmatprep.subr.bf16.mxu1 (!%p182_p3), %v1093_v0  ;;  %v1096_v3 = vld [vmem:[%s1312_s1 + $0x18] sm:$0xff] (!%p182_p3)   ;;  %v1097_v6 = vld [vmem:[%s1312_s1 + $0x20] sm:$0xff] (!%p182_p3)   ;;  %v1098_v7 = vld [vmem:[%s1312_s1 + $0x28] sm:$0xff] (!%p182_p3)  }
   0x8   : > { %1006 = vmatpush3.bf16.msra.mxu0 (!%p182_p3), %v1093_v0  ;;  %1061 = vmatpush3.bf16.msra.mxu1 (!%p182_p3), %v1093_v0  ;;  %v1099_v8 = vld [vmem:[%s1312_s1 + $0x30] sm:$0xff] (!%p182_p3)   ;;  %v1100_v9 = vld [vmem:[%s1312_s1 + $0x38] sm:$0xff] (!%p182_p3)   ;;  %v1231_v24 = vld [vmem:[%s1313_s2] ss:$0 sm:$0xff] (!%p182_p3) }
   0x9   : > { %1007 = vmatprep.subr.bf16.mxu0 (!%p182_p3), %v1094_v1  ;;  %1054 = vmatprep.subr.bf16.mxu1 (!%p182_p3), %v1094_v1 }
   0xc   : > { %1008 = vmatpush3.bf16.msra.mxu0 (!%p182_p3), %v1094_v1  ;;  %1062 = vmatpush3.bf16.msra.mxu1 (!%p182_p3), %v1094_v1 }
   0xd   : > { %1009 = vmatprep.subr.bf16.mxu0 (!%p182_p3), %v1095_v2  ;;  %1055 = vmatprep.subr.bf16.mxu1 (!%p182_p3), %v1095_v2 }
   0xe   : > { %s1320_s18 = smov (!%p219_p4, %s950_s18), 63 }
   0xf   : > { %s951_s23 = sshll.u32 %s1320_s18, 2  ;;  %s953_s10 = sshll.u32 %s1320_s18, 3 }
  0x10   : > { %s1194_s26 = scalar_lea.vmem %s1311_s0, %s951_s23  ;;  %1010 = vmatpush3.bf16.msra.mxu0 %v1095_v2  ;;  %1063 = vmatpush3.bf16.msra.mxu1 %v1095_v2  ;;  %s1236_s19 = scalar_lea.vmem %s1314_s3, %s953_s10 }
  0x11   : > { %v1101_v4 = vld [vmem:[%s1194_s26] sm:$0xff]   ;;  %1011 = vmatprep.subr.bf16.mxu0 %v1096_v3  ;;  %1056 = vmatprep.subr.bf16.mxu1 %v1096_v3  ;;  %v1103_v10 = vld [vmem:[%s1194_s26 + $0x8] sm:$0xff]   ;;  %v1105_v12 = vld [vmem:[%s1194_s26 + $0x10] sm:$0xff]  }
  0x12   : > { %v1102_v5 = vld [vmem:[%s1194_s26 + $0x40] sm:$0xff]   ;;  %1021 = vmatprep.mubr.bf16.mxu0 %v1101_v4  ;;  %v1104_v11 = vld [vmem:[%s1194_s26 + $0x48] sm:$0xff]   ;;  %v1106_v13 = vld [vmem:[%s1194_s26 + $0x50] sm:$0xff]  }
  0x13   : > { %1037 = vmatprep.mubr.bf16.mxu1 %v1102_v5  ;;  %v1107_v14 = vld [vmem:[%s1194_s26 + $0x18] sm:$0xff]   ;;  %v1109_v16 = vld [vmem:[%s1194_s26 + $0x20] sm:$0xff]   ;;  %v1111_v18 = vld [vmem:[%s1194_s26 + $0x28] sm:$0xff]  }
  0x14   : > { %1012 = vmatpush3.bf16.msra.mxu0 %v1096_v3  ;;  %1064 = vmatpush3.bf16.msra.mxu1 %v1096_v3  ;;  %v1108_v15 = vld [vmem:[%s1194_s26 + $0x58] sm:$0xff]   ;;  %v1110_v17 = vld [vmem:[%s1194_s26 + $0x60] sm:$0xff]   ;;  %v1112_v19 = vld [vmem:[%s1194_s26 + $0x68] sm:$0xff]  }
  0x15   : > { %1013 = vmatprep.subr.bf16.mxu0 %v1097_v6  ;;  %1057 = vmatprep.subr.bf16.mxu1 %v1097_v6  ;;  %v1113_v20 = vld [vmem:[%s1194_s26 + $0x30] sm:$0xff]   ;;  %v1115_v22 = vld [vmem:[%s1194_s26 + $0x38] sm:$0xff]  }
  0x16   : > { %v1114_v21 = vld [vmem:[%s1194_s26 + $0x70] sm:$0xff]   ;;  %v1116_v23 = vld [vmem:[%s1194_s26 + $0x78] sm:$0xff]  }
  0x18   : > { %1014 = vmatpush3.bf16.msra.mxu0 %v1097_v6  ;;  %1065 = vmatpush3.bf16.msra.mxu1 %v1097_v6 }
  0x19   : > { %1015 = vmatprep.subr.bf16.mxu0 %v1098_v7  ;;  %1058 = vmatprep.subr.bf16.mxu1 %v1098_v7 }
  0x1c   : > { %1016 = vmatpush3.bf16.msra.mxu0 %v1098_v7  ;;  %1066 = vmatpush3.bf16.msra.mxu1 %v1098_v7 }
  0x1d   : > { %1017 = vmatprep.subr.bf16.mxu0 %v1099_v8  ;;  %1059 = vmatprep.subr.bf16.mxu1 %v1099_v8 }
  0x20   : > { %1018 = vmatpush3.bf16.msra.mxu0 %v1099_v8  ;;  %1067 = vmatpush3.bf16.msra.mxu1 %v1099_v8 }
  0x21   : > { %1019 = vmatprep.subr.bf16.mxu0 %v1100_v9  ;;  %1060 = vmatprep.subr.bf16.mxu1 %v1100_v9 }
  0x24   : > { %1020 = vmatpush3.bf16.msra.mxu0 %v1100_v9  ;;  %1068 = vmatpush3.bf16.msra.mxu1 %v1100_v9 }
  0x27   : > { %1022 = vmatmul.mubr.bf16.vlgmr.msra.gmra.mrb[0].mxu0 %v1103_v10  ;;  %1038 = vmatmul.mubr.bf16.vlgmr.msra.gmra.mrb[0].mxu1 %v1104_v11 }
  0x28   : > { %1025 = vmatprep.mubr.bf16.mxu0 %v1105_v12  ;;  %1041 = vmatprep.mubr.bf16.mxu1 %v1106_v13 }
  0x2f   : > { %1026 = vmatmul.mubr.bf16.gmra.mrb[4].mxu0 %v1107_v14  ;;  %1042 = vmatmul.mubr.bf16.gmra.mrb[4].mxu1 %v1108_v15 }
  0x30   : > { %1029 = vmatprep.mubr.bf16.mxu0 %v1109_v16  ;;  %1045 = vmatprep.mubr.bf16.mxu1 %v1110_v17 }
  0x37   : > { %1030 = vmatmul.mubr.bf16.gmra.mrb[8].mxu0 %v1111_v18  ;;  %1046 = vmatmul.mubr.bf16.gmra.mrb[8].mxu1 %v1112_v19 }
  0x38   : > { %1033 = vmatprep.mubr.bf16.mxu0 %v1113_v20  ;;  %1049 = vmatprep.mubr.bf16.mxu1 %v1114_v21 }
  0x3f   : > { %1034 = vmatmul.mubr.bf16.gmra.mrb[12].mxu0 %v1115_v22  ;;  %1050 = vmatmul.mubr.bf16.gmra.mrb[12].mxu1 %v1116_v23 }
  0xfa   : > { %v1023_v25 = vpop.f32.mrb[0].mxu0  ;;  %v1039_v26 = vpop.f32.mrb[0].mxu1 }
  0xfb   : > { %v773_v27 = vadd.f32 %v1023_v25, %v1231_v24  ;;  %v789_v28 = vadd.f32 %v1039_v26, %v1231_v24  ;;  %v538_v29 = vpop.f32.mrb[1].mxu0  ;;  %v602_v30 = vpop.f32.mrb[1].mxu1 }
  0xfc   : > { %v771_v31 = vadd.f32 %v1231_v24, %v538_v29  ;;  %v787_v32 = vadd.f32 %v1231_v24, %v602_v30  ;;  %v1024_v33 = vpop.f32.mrb[2].mxu0  ;;  %v1040_v34 = vpop.f32.mrb[2].mxu1 }
  0xfd   : > { %805 = vst [vmem:[%s1236_s19 + $0x10] sm:$0xff] %v773_v27  ;;  %821 = vst [vmem:[%s1236_s19 + $0x90] sm:$0xff] %v789_v28  ;;  %v774_v35 = vadd.f32 %v1024_v33, %v1231_v24  ;;  %v790_v36 = vadd.f32 %v1040_v34, %v1231_v24  ;;  %v541_v37 = vpop.f32.mrb[3].mxu0  ;;  %v605_v38 = vpop.f32.mrb[3].mxu1 }
  0xfe   : > { %803 = vst [vmem:[%s1236_s19] sm:$0xff] %v771_v31  ;;  %819 = vst [vmem:[%s1236_s19 + $0x80] sm:$0xff] %v787_v32  ;;  %v772_v39 = vadd.f32 %v1231_v24, %v541_v37  ;;  %v788_v40 = vadd.f32 %v1231_v24, %v605_v38 }
  0xff   : > { %806 = vst [vmem:[%s1236_s19 + $0x18] sm:$0xff] %v774_v35  ;;  %822 = vst [vmem:[%s1236_s19 + $0x98] sm:$0xff] %v790_v36 }
 0x100   : > { %804 = vst [vmem:[%s1236_s19 + $0x8] sm:$0xff] %v772_v39  ;;  %820 = vst [vmem:[%s1236_s19 + $0x88] sm:$0xff] %v788_v40 }
 0x102   : > { %v1027_v41 = vpop.f32.mrb[4].mxu0  ;;  %v1043_v42 = vpop.f32.mrb[4].mxu1 }
 0x103   : > { %v777_v43 = vadd.f32 %v1027_v41, %v1231_v24  ;;  %v793_v44 = vadd.f32 %v1043_v42, %v1231_v24  ;;  %v554_v45 = vpop.f32.mrb[5].mxu0  ;;  %v618_v46 = vpop.f32.mrb[5].mxu1 }
 0x104   : > { %v775_v47 = vadd.f32 %v1231_v24, %v554_v45  ;;  %v791_v48 = vadd.f32 %v1231_v24, %v618_v46  ;;  %v1028_v49 = vpop.f32.mrb[6].mxu0  ;;  %v1044_v50 = vpop.f32.mrb[6].mxu1 }
 0x105   : > { %809 = vst [vmem:[%s1236_s19 + $0x30] sm:$0xff] %v777_v43  ;;  %825 = vst [vmem:[%s1236_s19 + $0xb0] sm:$0xff] %v793_v44  ;;  %v778_v51 = vadd.f32 %v1028_v49, %v1231_v24  ;;  %v794_v52 = vadd.f32 %v1044_v50, %v1231_v24  ;;  %v557_v53 = vpop.f32.mrb[7].mxu0  ;;  %v621_v54 = vpop.f32.mrb[7].mxu1 }
 0x106   : > { %807 = vst [vmem:[%s1236_s19 + $0x20] sm:$0xff] %v775_v47  ;;  %823 = vst [vmem:[%s1236_s19 + $0xa0] sm:$0xff] %v791_v48  ;;  %v776_v55 = vadd.f32 %v1231_v24, %v557_v53  ;;  %v792_v56 = vadd.f32 %v1231_v24, %v621_v54 }
 0x107   : > { %810 = vst [vmem:[%s1236_s19 + $0x38] sm:$0xff] %v778_v51  ;;  %826 = vst [vmem:[%s1236_s19 + $0xb8] sm:$0xff] %v794_v52 }
 0x108   : > { %808 = vst [vmem:[%s1236_s19 + $0x28] sm:$0xff] %v776_v55  ;;  %824 = vst [vmem:[%s1236_s19 + $0xa8] sm:$0xff] %v792_v56 }
 0x10a   : > { %v1031_v57 = vpop.f32.mrb[8].mxu0  ;;  %v1047_v58 = vpop.f32.mrb[8].mxu1 }
 0x10b   : > { %v781_v59 = vadd.f32 %v1031_v57, %v1231_v24  ;;  %v797_v60 = vadd.f32 %v1047_v58, %v1231_v24  ;;  %v570_v61 = vpop.f32.mrb[9].mxu0  ;;  %v634_v62 = vpop.f32.mrb[9].mxu1 }
 0x10c   : > { %v779_v63 = vadd.f32 %v1231_v24, %v570_v61  ;;  %v795_v0 = vadd.f32 %v1231_v24, %v634_v62  ;;  %v1032_v1 = vpop.f32.mrb[10].mxu0  ;;  %v1048_v2 = vpop.f32.mrb[10].mxu1 }
 0x10d   : > { %813 = vst [vmem:[%s1236_s19 + $0x50] sm:$0xff] %v781_v59  ;;  %829 = vst [vmem:[%s1236_s19 + $0xd0] sm:$0xff] %v797_v60  ;;  %v782_v3 = vadd.f32 %v1032_v1, %v1231_v24  ;;  %v798_v4 = vadd.f32 %v1048_v2, %v1231_v24  ;;  %v573_v5 = vpop.f32.mrb[11].mxu0  ;;  %v637_v6 = vpop.f32.mrb[11].mxu1 }
 0x10e   : > { %811 = vst [vmem:[%s1236_s19 + $0x40] sm:$0xff] %v779_v63  ;;  %827 = vst [vmem:[%s1236_s19 + $0xc0] sm:$0xff] %v795_v0  ;;  %v780_v7 = vadd.f32 %v1231_v24, %v573_v5  ;;  %v796_v8 = vadd.f32 %v1231_v24, %v637_v6 }
 0x10f   : > { %814 = vst [vmem:[%s1236_s19 + $0x58] sm:$0xff] %v782_v3  ;;  %830 = vst [vmem:[%s1236_s19 + $0xd8] sm:$0xff] %v798_v4 }
 0x110   : > { %812 = vst [vmem:[%s1236_s19 + $0x48] sm:$0xff] %v780_v7  ;;  %828 = vst [vmem:[%s1236_s19 + $0xc8] sm:$0xff] %v796_v8 }
 0x112   : > { %v1035_v9 = vpop.f32.mrb[12].mxu0  ;;  %v1051_v10 = vpop.f32.mrb[12].mxu1 }
 0x113   : > { %v785_v11 = vadd.f32 %v1035_v9, %v1231_v24  ;;  %v801_v12 = vadd.f32 %v1051_v10, %v1231_v24  ;;  %v586_v13 = vpop.f32.mrb[13].mxu0  ;;  %v650_v14 = vpop.f32.mrb[13].mxu1 }
 0x114   : > { %v783_v15 = vadd.f32 %v1231_v24, %v586_v13  ;;  %v799_v16 = vadd.f32 %v1231_v24, %v650_v14  ;;  %v1036_v17 = vpop.f32.mrb[14].mxu0  ;;  %v1052_v18 = vpop.f32.mrb[14].mxu1 }
 0x115   : > { %817 = vst [vmem:[%s1236_s19 + $0x70] sm:$0xff] %v785_v11  ;;  %833 = vst [vmem:[%s1236_s19 + $0xf0] sm:$0xff] %v801_v12  ;;  %v786_v19 = vadd.f32 %v1036_v17, %v1231_v24  ;;  %v802_v20 = vadd.f32 %v1052_v18, %v1231_v24  ;;  %v589_v21 = vpop.f32.mrb[15].mxu0  ;;  %v653_v22 = vpop.f32.mrb[15].mxu1 }
 0x116   : > { %815 = vst [vmem:[%s1236_s19 + $0x60] sm:$0xff] %v783_v15  ;;  %831 = vst [vmem:[%s1236_s19 + $0xe0] sm:$0xff] %v799_v16  ;;  %v784_v23 = vadd.f32 %v1231_v24, %v589_v21  ;;  %v800_v25 = vadd.f32 %v1231_v24, %v653_v22 }
 0x117   : > { %818 = vst [vmem:[%s1236_s19 + $0x78] sm:$0xff] %v786_v19  ;;  %834 = vst [vmem:[%s1236_s19 + $0xf8] sm:$0xff] %v802_v20 }
 0x118   : > { %816 = vst [vmem:[%s1236_s19 + $0x68] sm:$0xff] %v784_v23  ;;  %832 = vst [vmem:[%s1236_s19 + $0xe8] sm:$0xff] %v800_v25 }
 0x119 PF: > { %s13_s14 = sadd.s32 1, %s1139_s14   ;;  %s1315_s12 = smov %s1135_s13 }
 0x11a   : > { %p10_p5 = scmp.ge.s32.totalorder %s13_s14, 4   ;;  %s1316_s13 = smov %s1318_s15 }
 0x11c   :  { %12 = sbr.rel (!%p10_p5) target bundleno = 2 (0x2), region = 76 }

</bundles_post_ra>
